<compile_context>
chip_gen: v7x
topology: tpu7x:2x2x1
jax: 0.10.0
libtpu: 0.0.40
codegen_flags: <defaults>
</compile_context>

<pallas_src>
import jax
import jax.numpy as jnp
from jax.experimental import pallas as pl
from jax.experimental.pallas import tpu as pltpu


def _conv1x1_hardsig_kernel(x_ref, wb_ref, o_ref):
    """1x1 conv + hardsigmoid-style activation on an already-padded slab.

    x_ref:  (N, Cin, M)       f32, pixels on the lane axis (M = Hp*Wp)
    wb_ref: (Cin+1, Cout, 1)  f32, rows 0..Cin-1 = weights, row Cin = bias(+3)
    o_ref:  (N, Cout, M)      f32
    """
    x = x_ref[...]
    wb = wb_ref[...]
    cin = x.shape[1]

    # 1x1 conv == per-pixel linear map; unrolled broadcasted VPU FMAs (no MXU).
    y = x[:, 0:1, :] * wb[0]                   # (N,1,M) * (Cout,1) -> (N,Cout,M)
    for ci in range(1, cin):
        y = y + x[:, ci:ci + 1, :] * wb[ci]
    y = y + wb[cin]                            # per-channel bias (+3 folded in)

    # clamp(0, 6) / 6
    y = jnp.clip(y, 0.0, 6.0) * (1.0 / 6.0)
    o_ref[...] = y.astype(o_ref.dtype)


@jax.jit
def conv1x1_pad1_hardsigmoid(x_nchw, weight_oi, bias_o):
    """x_nchw: (N, Cin, H, W); weight_oi: (Cout, Cin); bias_o: (Cout,)."""
    n, cin, h, w = x_nchw.shape
    cout = weight_oi.shape[0]
    hp, wp = h + 2, w + 2
    m = hp * wp

    # Zero-pad in the wrapper (padding=1), then flatten spatial dims so pixels
    # land on the lane axis. Border pixels are zero -> conv output == bias ->
    # hardsigmoid(bias), which is exactly what padding=1 + 1x1 conv requires.
    xp = jnp.pad(x_nchw.astype(jnp.float32), ((0, 0), (0, 0), (1, 1), (1, 1)))
    x_rows = xp.reshape(n, cin, m)

    # Pack weights (transposed so each row broadcasts against an (N,1,M) slab)
    # and the bias (with the activation's "+3" folded in) into one operand.
    w_rows = weight_oi.astype(jnp.float32).T.reshape(cin, cout, 1)
    b_row = (bias_o.astype(jnp.float32) + 3.0).reshape(1, cout, 1)
    wb = jnp.concatenate([w_rows, b_row], axis=0)  # (Cin+1, Cout, 1)

    out_flat = pl.pallas_call(
        _conv1x1_hardsig_kernel,
        out_shape=jax.ShapeDtypeStruct((n, cout, m), jnp.float32),
        in_specs=[
            pl.BlockSpec(memory_space=pltpu.MemorySpace.VMEM),
            pl.BlockSpec(memory_space=pltpu.MemorySpace.VMEM),
        ],
        out_specs=pl.BlockSpec(memory_space=pltpu.MemorySpace.VMEM),
    )(x_rows, wb)

    # Free reshape to the final NCHW-with-padding layout.
    return out_flat.reshape(n, cout, hp, wp)


def reference(x_nchw, weight_oi, bias_o):
    # Pure-JAX reference for the same math (pad -> 1x1 conv -> hardsigmoid).
    xp = jnp.pad(x_nchw, ((0, 0), (0, 0), (1, 1), (1, 1)))
    y = jnp.einsum("nchw,oc->nohw", xp, weight_oi) + bias_o[None, :, None, None]
    return jnp.clip(y + 3.0, 0.0, 6.0) / 6.0


if __name__ == "__main__":
    key = jax.random.PRNGKey(0)
    kx, kw, kb = jax.random.split(key, 3)

    # Small shapes consistent with the module: N=2, Cin=3, H=W=16.
    x = jax.random.normal(kx, (2, 3, 16, 16), dtype=jnp.float32)
    # Conv2d(3, 8, 1) params: weight (8, 3, 1, 1) -> (8, 3), bias (8,)
    weight = jax.random.normal(kw, (8, 3), dtype=jnp.float32) * 0.1
    bias = jax.random.normal(kb, (8,), dtype=jnp.float32) * 0.1

    out = conv1x1_pad1_hardsigmoid(x, weight, bias)
    out = jax.block_until_ready(out)

    ref = reference(x, weight, bias)
    assert out.shape == (2, 8, 18, 18), out.shape
    assert jnp.allclose(out, ref, atol=1e-5, rtol=1e-5), float(
        jnp.max(jnp.abs(out - ref)))

    print("KERNEL_OK")
</pallas_src>

<mosaic_0001>
module attributes {stable_mosaic.version = 11 : i64} {
  func.func @_conv1x1_hardsig_kernel(%arg0: memref<2x3x324xf32, #tpu.memory_space<vmem>>, %arg1: memref<4x8x1xf32, #tpu.memory_space<vmem>>, %arg2: memref<2x8x324xf32, #tpu.memory_space<vmem>>) attributes {dimension_semantics = [], scalar_prefetch = 0 : i64, scratch_operands = 0 : i64, tpu.core_type = #tpu.core_type<tc>} {
    %c0 = arith.constant 0 : index
    %c0_0 = arith.constant 0 : index
    %c0_1 = arith.constant 0 : index
    %0 = vector.load %arg0[%c0, %c0_0, %c0_1] : memref<2x3x324xf32, #tpu.memory_space<vmem>>, vector<2x3x324xf32>
    %c0_2 = arith.constant 0 : index
    %c0_3 = arith.constant 0 : index
    %c0_4 = arith.constant 0 : index
    %1 = vector.load %arg1[%c0_2, %c0_3, %c0_4] : memref<4x8x1xf32, #tpu.memory_space<vmem>>, vector<4x8x1xf32>
    %2 = vector.extract_strided_slice %0 {offsets = [0, 0, 0], sizes = [2, 1, 324], strides = [1, 1, 1]} : vector<2x3x324xf32> to vector<2x1x324xf32>
    %3 = vector.extract_strided_slice %1 {offsets = [0, 0, 0], sizes = [1, 8, 1], strides = [1, 1, 1]} : vector<4x8x1xf32> to vector<1x8x1xf32>
    %4 = vector.shape_cast %3 : vector<1x8x1xf32> to vector<8x1xf32>
    %5 = vector.shape_cast %4 : vector<8x1xf32> to vector<1x8x1xf32>
    %6 = vector.broadcast %2 : vector<2x1x324xf32> to vector<2x8x324xf32>
    %7 = vector.broadcast %5 : vector<1x8x1xf32> to vector<2x8x324xf32>
    %8 = arith.mulf %6, %7 : vector<2x8x324xf32>
    %9 = vector.extract_strided_slice %0 {offsets = [0, 1, 0], sizes = [2, 1, 324], strides = [1, 1, 1]} : vector<2x3x324xf32> to vector<2x1x324xf32>
    %10 = vector.extract_strided_slice %1 {offsets = [1, 0, 0], sizes = [1, 8, 1], strides = [1, 1, 1]} : vector<4x8x1xf32> to vector<1x8x1xf32>
    %11 = vector.shape_cast %10 : vector<1x8x1xf32> to vector<8x1xf32>
    %12 = vector.shape_cast %11 : vector<8x1xf32> to vector<1x8x1xf32>
    %13 = vector.broadcast %9 : vector<2x1x324xf32> to vector<2x8x324xf32>
    %14 = vector.broadcast %12 : vector<1x8x1xf32> to vector<2x8x324xf32>
    %15 = arith.mulf %13, %14 : vector<2x8x324xf32>
    %16 = arith.addf %8, %15 : vector<2x8x324xf32>
    %17 = vector.extract_strided_slice %0 {offsets = [0, 2, 0], sizes = [2, 1, 324], strides = [1, 1, 1]} : vector<2x3x324xf32> to vector<2x1x324xf32>
    %18 = vector.extract_strided_slice %1 {offsets = [2, 0, 0], sizes = [1, 8, 1], strides = [1, 1, 1]} : vector<4x8x1xf32> to vector<1x8x1xf32>
    %19 = vector.shape_cast %18 : vector<1x8x1xf32> to vector<8x1xf32>
    %20 = vector.shape_cast %19 : vector<8x1xf32> to vector<1x8x1xf32>
    %21 = vector.broadcast %17 : vector<2x1x324xf32> to vector<2x8x324xf32>
    %22 = vector.broadcast %20 : vector<1x8x1xf32> to vector<2x8x324xf32>
    %23 = arith.mulf %21, %22 : vector<2x8x324xf32>
    %24 = arith.addf %16, %23 : vector<2x8x324xf32>
    %25 = vector.extract_strided_slice %1 {offsets = [3, 0, 0], sizes = [1, 8, 1], strides = [1, 1, 1]} : vector<4x8x1xf32> to vector<1x8x1xf32>
    %26 = vector.shape_cast %25 : vector<1x8x1xf32> to vector<8x1xf32>
    %27 = vector.shape_cast %26 : vector<8x1xf32> to vector<1x8x1xf32>
    %28 = vector.broadcast %27 : vector<1x8x1xf32> to vector<2x8x324xf32>
    %29 = arith.addf %24, %28 : vector<2x8x324xf32>
    %cst = arith.constant 0.000000e+00 : f32
    %cst_5 = arith.constant 6.000000e+00 : f32
    %30 = vector.broadcast %cst : f32 to vector<2x8x324xf32>
    %31 = arith.maximumf %30, %29 : vector<2x8x324xf32>
    %32 = vector.broadcast %cst_5 : f32 to vector<2x8x324xf32>
    %33 = arith.minimumf %32, %31 : vector<2x8x324xf32>
    %cst_6 = arith.constant 0.166666672 : f32
    %34 = vector.broadcast %cst_6 : f32 to vector<2x8x324xf32>
    %35 = arith.mulf %33, %34 : vector<2x8x324xf32>
    %c0_7 = arith.constant 0 : index
    %c0_8 = arith.constant 0 : index
    %c0_9 = arith.constant 0 : index
    %36 = vector.load %arg2[%c0_7, %c0_8, %c0_9] : memref<2x8x324xf32, #tpu.memory_space<vmem>>, vector<2x8x324xf32>
    tpu.vector_store %arg2[%c0_7, %c0_8, %c0_9], %35 {strides = array<i32>} : memref<2x8x324xf32, #tpu.memory_space<vmem>>, vector<2x8x324xf32>,
    return
  }
}

</mosaic_0001>

<bundles_post_ra>
// kernel: conv1x1_pad1_hardsigmoid.1
= control target key start
LH: loop header
LB: loop body
LE: loop exit
PB: predicated region body
PF: predicated region fallthrough
CT: control target
= control target key end

     0   :  { %v273_v0 = vmov 0   ;;  %v23_v5 = vlaneseq  ;;  %vm261_vm0 = vcmask 556032   ;;  %s331_s1 = inlined_call_operand.vmem [shape: f32[4,8,1], index: 1, kind: input, shape index: {}]   ;;  %s332_s0 = inlined_call_operand.vmem [shape: f32[2,3,324], index: 0, kind: input, shape index: {}]   ;;  %s333_s2 = inlined_call_operand.vmem [shape: f32[2,8,324], index: 2, kind: output, shape index: {}]  }
   0x1   :  { %271 = vset.pattern.permute.xlu0 %v273_v0  ;;  %v15_v1 = vld [vmem:[%s331_s1] sm:$0xff]  ;;  %272 = vset.pattern.permute.xlu1 %v273_v0  ;;  %v17_v2 = vld [vmem:[%s331_s1 + $0x10] sm:$0xff]  ;;  %v16_v3 = vld [vmem:[%s331_s1 + $0x8] sm:$0xff] }
   0x2   :  { %79 = vperm.xlu0 %271, %v15_v1   ;;  %215 = vperm.xlu1 %272, %v17_v2   ;;  %v18_v4 = vld [vmem:[%s331_s1 + $0x18] sm:$0xff]  ;;  %v24_v6 = vshrl.u32 %v23_v5, 7  ;;  %v11_v9 = vld [vmem:[%s332_s0] sm:$0x77]  ;;  %v12_v10 = vld [vmem:[%s332_s0 + $0x8] sm:$0x7] }
   0x3   :  { %v13_v12 = vld [vmem:[%s332_s0 + $0xc] sm:$0x77]  ;;  %v14_v13 = vld [vmem:[%s332_s0 + $0x14] sm:$0x7] }
   0x4   :  { %v25_v7 = vsub.s32 0, %v24_v6  ;;  %v29_v8 = vsub.s32 4, %v24_v6  ;;  %v161_v11 = vsub.s32 2, %v24_v6  ;;  %v165_v16 = vsub.s32 6, %v24_v6 }
   0x5   :  { %v90_v17 = vsub.s32 1, %v24_v6  ;;  %v94_v18 = vsub.s32 5, %v24_v6 }
   0x6   :  { %144 = vperm.xlu0 %271, %v16_v3   ;;  %232 = vperm.xlu1 %272, %v18_v4   ;;  %v26_v14 = vrot.slane %v11_v9, %v25_v7  ;;  %v30_v15 = vrot.slane %v11_v9, %v29_v8  ;;  %v34_v19 = vrot.slane %v12_v10, %v25_v7 }
   0x7   :  { %v38_v20 = vrot.slane %v13_v12, %v25_v7  ;;  %v42_v21 = vrot.slane %v13_v12, %v29_v8  ;;  %v46_v22 = vrot.slane %v14_v13, %v25_v7  ;;  %v162_v25 = vrot.slane %v11_v9, %v161_v11 }
   0x8   :  { %v56_v23 = vrot.slane %v26_v14, %v25_v7  ;;  %v60_v24 = vrot.slane %v30_v15, %v25_v7  ;;  %v166_v26 = vrot.slane %v11_v9, %v165_v16  ;;  %v170_v27 = vrot.slane %v12_v10, %v161_v11 }
   0x9   :  { %v174_v28 = vrot.slane %v13_v12, %v161_v11  ;;  %v178_v29 = vrot.slane %v13_v12, %v165_v16  ;;  %v182_v30 = vrot.slane %v14_v13, %v161_v11  ;;  %v91_v31 = vrot.slane %v11_v9, %v90_v17 }
   0xa   :  { %v95_v32 = vrot.slane %v11_v9, %v94_v18  ;;  %v99_v33 = vrot.slane %v12_v10, %v90_v17  ;;  %v103_v34 = vrot.slane %v13_v12, %v90_v17  ;;  %v64_v35 = vrot.slane %v34_v19, %v25_v7 }
   0xb   :  { %v68_v36 = vrot.slane %v38_v20, %v25_v7  ;;  %v107_v37 = vrot.slane %v13_v12, %v94_v18  ;;  %v111_v38 = vrot.slane %v14_v13, %v90_v17  ;;  %v72_v39 = vrot.slane %v42_v21, %v25_v7 }
   0xc   :  { %v76_v40 = vrot.slane %v46_v22, %v25_v7  ;;  %v192_v41 = vrot.slane %v162_v25, %v161_v11  ;;  %v196_v42 = vrot.slane %v166_v26, %v161_v11  ;;  %v200_v44 = vrot.slane %v170_v27, %v161_v11 }
   0xd   :  { %v204_v45 = vrot.slane %v174_v28, %v161_v11  ;;  %v208_v46 = vrot.slane %v178_v29, %v161_v11  ;;  %v212_v47 = vrot.slane %v182_v30, %v161_v11  ;;  %v121_v48 = vrot.slane %v91_v31, %v90_v17 }
   0xe   :  { %v125_v49 = vrot.slane %v95_v32, %v90_v17  ;;  %v129_v50 = vrot.slane %v99_v33, %v90_v17  ;;  %v133_v51 = vrot.slane %v103_v34, %v90_v17  ;;  %v137_v54 = vrot.slane %v107_v37, %v90_v17 }
   0xf   :  { %v141_v55 = vrot.slane %v111_v38, %v90_v17 }
  0x81   :  { %v80_v43 = vpop.permute.xlu0 %79  ;;  %v216_v60 = vpop.permute.xlu1 %215 }
  0x82   :  { %v82_v52 = vmul.f32 %v80_v43, %v56_v23  ;;  %v83_v53 = vmul.f32 %v80_v43, %v60_v24  ;;  %v84_v56 = vmul.f32 %v80_v43, %v64_v35  ;;  %v85_v57 = vmul.f32 %v80_v43, %v68_v36 }
  0x83   :  { %v86_v58 = vmul.f32 %v80_v43, %v72_v39  ;;  %v87_v59 = vmul.f32 %v80_v43, %v76_v40  ;;  %v218_v61 = vmul.f32 %v216_v60, %v192_v41  ;;  %v219_v62 = vmul.f32 %v216_v60, %v196_v42 }
  0x84   :  { %v220_v63 = vmul.f32 %v216_v60, %v200_v44  ;;  %v221_v0 = vmul.f32 %v216_v60, %v204_v45  ;;  %v222_v6 = vmul.f32 %v216_v60, %v208_v46  ;;  %v223_v7 = vmul.f32 %v216_v60, %v212_v47 }
  0x85   :  { %v145_v1 = vpop.permute.xlu0 %144  ;;  %v233_v20 = vpop.permute.xlu1 %232 }
  0x86   :  { %v147_v2 = vmul.f32 %v145_v1, %v121_v48  ;;  %v148_v3 = vmul.f32 %v145_v1, %v125_v49  ;;  %v149_v4 = vmul.f32 %v145_v1, %v129_v50  ;;  %v150_v5 = vmul.f32 %v145_v1, %v133_v51 }
  0x87   :  { %v151_v8 = vmul.f32 %v145_v1, %v137_v54  ;;  %v152_v9 = vmul.f32 %v145_v1, %v141_v55 }
  0x88   :  { %v153_v10 = vadd.f32 %v147_v2, %v82_v52  ;;  %v154_v11 = vadd.f32 %v148_v3, %v83_v53  ;;  %v155_v12 = vadd.f32 %v149_v4, %v84_v56  ;;  %v156_v13 = vadd.f32 %v150_v5, %v85_v57 }
  0x89   :  { %v157_v14 = vadd.f32 %v151_v8, %v86_v58  ;;  %v158_v15 = vadd.f32 %v152_v9, %v87_v59 }
  0x8a   :  { %v224_v16 = vadd.f32 %v218_v61, %v153_v10  ;;  %v225_v17 = vadd.f32 %v219_v62, %v154_v11  ;;  %v226_v18 = vadd.f32 %v220_v63, %v155_v12  ;;  %v227_v19 = vadd.f32 %v221_v0, %v156_v13 }
  0x8b   :  { %v228_v21 = vadd.f32 %v222_v6, %v157_v14  ;;  %v229_v22 = vadd.f32 %v223_v7, %v158_v15 }
  0x8c   :  { %v235_v23 = vadd.f32 %v233_v20, %v224_v16  ;;  %v236_v24 = vadd.f32 %v233_v20, %v225_v17  ;;  %v237_v25 = vadd.f32 %v233_v20, %v226_v18  ;;  %v238_v26 = vadd.f32 %v233_v20, %v227_v19 }
  0x8d   :  { %v239_v27 = vadd.f32 %v233_v20, %v228_v21  ;;  %v240_v28 = vadd.f32 %v233_v20, %v229_v22 }
  0x8e   :  { %v241_v29 = vmax.f32 %v235_v23, 0.0  ;;  %v242_v30 = vmax.f32 %v236_v24, 0.0  ;;  %v243_v31 = vmax.f32 %v237_v25, 0.0  ;;  %v244_v32 = vmax.f32 %v238_v26, 0.0 }
  0x8f   :  { %v245_v33 = vmax.f32 %v239_v27, 0.0  ;;  %v246_v34 = vmax.f32 %v240_v28, 0.0 }
  0x90   :  { %v247_v35 = vmin.f32 %v241_v29, 6.0  ;;  %v248_v36 = vmin.f32 %v242_v30, 6.0  ;;  %v249_v37 = vmin.f32 %v243_v31, 6.0  ;;  %v250_v38 = vmin.f32 %v244_v32, 6.0 }
  0x91   :  { %v251_v39 = vmin.f32 %v245_v33, 6.0  ;;  %v252_v40 = vmin.f32 %v246_v34, 6.0 }
  0x92   :  { %v253_v41 = vmul.f32 0.16666667, %v247_v35  ;;  %v254_v42 = vmul.f32 0.16666667, %v248_v36  ;;  %v255_v43 = vmul.f32 0.16666667, %v249_v37 }
  0x93   :  { %v256_v44 = vmul.f32 0.16666667, %v250_v38  ;;  %v257_v45 = vmul.f32 0.16666667, %v251_v39  ;;  %v258_v46 = vmul.f32 0.16666667, %v252_v40 }
  0x94   :  { %259 = vst [vmem:[%s333_s2] sm:$0xff] %v253_v41  ;;  %260 = vst [vmem:[%s333_s2 + $0x8] sm:$0xff] %v254_v42 }
  0x95   :  { %262 = vst.msk [vmem:[%s333_s2 + $0x10] sm:$0xff] %vm261_vm0, %v255_v43  ;;  %263 = vst [vmem:[%s333_s2 + $0x18] sm:$0xff] %v256_v44 }
  0x96   :  { %264 = vst [vmem:[%s333_s2 + $0x20] sm:$0xff] %v257_v45  ;;  %265 = vst.msk [vmem:[%s333_s2 + $0x28] sm:$0xff] %vm261_vm0, %v258_v46 }

</bundles_post_ra>
